<compile_context>
chip_gen: v6e
topology: v6e:2x2x1
jax: 0.10.0
libtpu: 0.0.40
codegen_flags: <defaults>
</compile_context>

<pallas_src>
import functools

import jax
import jax.numpy as jnp
from jax.experimental import pallas as pl
from jax.experimental.pallas import tpu as pltpu

NEG_SLOPE = 0.01  # nn.LeakyReLU default


def _softmax_lastdim(x):
    x = x - jnp.max(x, axis=-1, keepdims=True)
    e = jnp.exp(x)
    return e * pl.reciprocal(jnp.sum(e, axis=-1, keepdims=True), approx=True)


def decoder_kernel(num_class, x_ref, w13_ref, b13_ref, wbd_ref, bbd_ref, out_ref):
    # x is used in its native dtype (f32 or bf16); the wrapper casts the
    # first-layer weight to match, so bf16 inputs take the MXU bf16 fast path.
    x = x_ref[...]

    # Fused first layer of both heads: [h_classify | h_domain], f32 accum.
    h = jnp.dot(x, w13_ref[...], preferred_element_type=jnp.float32) + b13_ref[...]
    h = jnp.where(h > 0, h, NEG_SLOPE * h)  # LeakyReLU

    # Fused block-diagonal second layer -> logits [classify | domain].
    y = jnp.dot(h, wbd_ref[...], preferred_element_type=jnp.float32) + bbd_ref[...]

    c = _softmax_lastdim(y[:, :num_class])
    d = _softmax_lastdim(y[:, num_class:])

    # Write each softmaxed segment directly into its lane slice (no concat).
    out_ref[:, :num_class] = c.astype(out_ref.dtype)
    out_ref[:, num_class:] = d.astype(out_ref.dtype)


def classifier_decoder_forward(features, params, num_class, num_domain,
                               tile_n=512):
    """Eval-mode forward.

    Returns (res, loss) where res is [N, num_class + num_domain]
    (softmax(classify) | softmax(domain)).  torch.split(res, 1) is a trivial
    per-row view left to the caller (avoids N tiny device slices here).
    """
    n, c = features.shape
    w1, b1, w2, b2, w3, b3, w4, b4 = params
    out_dim = num_class + num_domain
    hdim = w1.shape[1] + w3.shape[1]  # 16 + 16 = 32

    # --- host-side weight packing -------------------------------------------
    # First layer: concat along output dim; match feature dtype for the MXU.
    w13 = jnp.concatenate([w1, w3], axis=1).astype(features.dtype)
    b13 = jnp.concatenate([b1, b3], axis=1).astype(jnp.float32)
    # Second layer: block-diagonal so one matmul yields [c_logits | d_logits].
    wbd = jnp.zeros((hdim, out_dim), jnp.float32)
    wbd = wbd.at[:w2.shape[0], :num_class].set(w2.astype(jnp.float32))
    wbd = wbd.at[w2.shape[0]:, num_class:].set(w4.astype(jnp.float32))
    bbd = jnp.concatenate([b2, b4], axis=1).astype(jnp.float32)

    # --- row tiling -----------------------------------------------------------
    itemsize = jnp.dtype(features.dtype).itemsize
    # Keep 2 (double-buffered) feature tiles well under scoped VMEM on every
    # generation (v5e 16 MiB default / v7x 64 MiB physical): budget ~8 MiB.
    vmem_budget = 8 * 1024 * 1024
    max_tile = max(8, (vmem_budget // (2 * c * itemsize)) // 8 * 8)
    tile = min(tile_n, max_tile, ((n + 7) // 8) * 8)
    tile = max(8, (tile // 8) * 8)

    n_pad = ((n + tile - 1) // tile) * tile
    x = features if n_pad == n else jnp.pad(features, ((0, n_pad - n), (0, 0)))
    grid = (n_pad // tile,)

    resident = lambda shape: pl.BlockSpec(shape, lambda i: (0, 0))
    res = pl.pallas_call(
        functools.partial(decoder_kernel, num_class),
        out_shape=jax.ShapeDtypeStruct((n_pad, out_dim), jnp.float32),
        grid=grid,
        in_specs=[
            pl.BlockSpec((tile, c), lambda i: (i, 0)),      # features (tiled)
            resident(w13.shape), resident(b13.shape),       # fused layer 1
            resident(wbd.shape), resident(bbd.shape),       # fused layer 2
        ],
        out_specs=pl.BlockSpec((tile, out_dim), lambda i: (i, 0)),
        compiler_params=pltpu.CompilerParams(
            dimension_semantics=("parallel",)),
    )(x, w13, b13, wbd, bbd)

    if n_pad != n:
        res = res[:n]
    return res, {}


def _init_linear(key, in_f, out_f):
    """Deterministic init in PyTorch nn.Linear convention, then transpose the
    weight to [in, out] for the kernel."""
    k1, k2 = jax.random.split(key)
    bound = 1.0 / (in_f ** 0.5)
    w = jax.random.uniform(k1, (out_f, in_f), jnp.float32, -bound, bound)
    b = jax.random.uniform(k2, (out_f,), jnp.float32, -bound, bound)
    return w.T, b.reshape(1, out_f)


def _reference(features, params):
    w1, b1, w2, b2, w3, b3, w4, b4 = params
    f = features.astype(jnp.float32)
    h1 = jax.nn.leaky_relu(f @ w1 + b1, NEG_SLOPE)
    c = jax.nn.softmax(h1 @ w2 + b2, axis=-1)
    h2 = jax.nn.leaky_relu(f @ w3 + b3, NEG_SLOPE)
    d = jax.nn.softmax(h2 @ w4 + b4, axis=-1)
    return jnp.concatenate([c, d], axis=-1)


if __name__ == "__main__":
    # Small synthetic config: input_channels=32, NUM_CLASS=4, NUM_DOMAIN=2,
    # DECODING_TYPE='TwoBranch', batch of 8 feature rows.
    N, C = 8, 32
    NUM_CLASS, NUM_DOMAIN = 4, 2

    key = jax.random.PRNGKey(0)
    kx, k1, k2, k3, k4 = jax.random.split(key, 5)

    features = jax.random.normal(kx, (N, C), jnp.float32)
    w1, b1 = _init_linear(k1, C, 16)
    w2, b2 = _init_linear(k2, 16, NUM_CLASS)
    w3, b3 = _init_linear(k3, C, 16)
    w4, b4 = _init_linear(k4, 16, NUM_DOMAIN)
    params = (w1, b1, w2, b2, w3, b3, w4, b4)

    res, loss = classifier_decoder_forward(features, params,
                                           NUM_CLASS, NUM_DOMAIN)
    jax.block_until_ready(res)

    ref = _reference(features, params)
    assert res.shape == (N, NUM_CLASS + NUM_DOMAIN)
    # Tolerance relaxed slightly for pl.reciprocal(approx=True) in the softmax.
    assert jnp.allclose(res, ref, atol=2e-3, rtol=2e-3), "mismatch vs reference"
    print("KERNEL_OK")
</pallas_src>

<mosaic_0001>
module attributes {stable_mosaic.version = 11 : i64} {
  func.func @decoder_kernel(%arg0: i32, %arg1: memref<8x32xf32, #tpu.memory_space<vmem>>, %arg2: memref<32x32xf32, #tpu.memory_space<vmem>>, %arg3: memref<1x32xf32, #tpu.memory_space<vmem>>, %arg4: memref<32x6xf32, #tpu.memory_space<vmem>>, %arg5: memref<1x6xf32, #tpu.memory_space<vmem>>, %arg6: memref<8x6xf32, #tpu.memory_space<vmem>>) attributes {dimension_semantics = [#tpu.dimension_semantics<parallel>], iteration_bounds = array<i64: 1>, scalar_prefetch = 0 : i64, scratch_operands = 0 : i64, tpu.core_type = #tpu.core_type<tc>, window_params = [{transform_indices = @transform_0, window_bounds = array<i64: 8, 32>}, {pipeline_mode = #tpu.pipeline_mode<synchronous>, transform_indices = @transform_1, window_bounds = array<i64: 32, 32>}, {pipeline_mode = #tpu.pipeline_mode<synchronous>, transform_indices = @transform_2, window_bounds = array<i64: 1, 32>}, {pipeline_mode = #tpu.pipeline_mode<synchronous>, transform_indices = @transform_3, window_bounds = array<i64: 32, 6>}, {pipeline_mode = #tpu.pipeline_mode<synchronous>, transform_indices = @transform_4, window_bounds = array<i64: 1, 6>}, {transform_indices = @transform_5, window_bounds = array<i64: 8, 6>}]} {
    %c0 = arith.constant 0 : index
    %c0_0 = arith.constant 0 : index
    %0 = vector.load %arg1[%c0, %c0_0] : memref<8x32xf32, #tpu.memory_space<vmem>>, vector<8x32xf32>
    %c0_1 = arith.constant 0 : index
    %c0_2 = arith.constant 0 : index
    %1 = vector.load %arg2[%c0_1, %c0_2] : memref<32x32xf32, #tpu.memory_space<vmem>>, vector<32x32xf32>
    %cst = arith.constant dense<0.000000e+00> : vector<8x32xf32>
    %2 = tpu.matmul %0, %1, %cst {dimension_numbers = #tpu.dot_dimension_numbers<[1], [0], [0], [1], [0, 0, 1, 1], [], []>} : vector<8x32xf32>, vector<32x32xf32>, vector<8x32xf32> -> vector<8x32xf32>
    %c0_3 = arith.constant 0 : index
    %c0_4 = arith.constant 0 : index
    %3 = vector.load %arg3[%c0_3, %c0_4] : memref<1x32xf32, #tpu.memory_space<vmem>>, vector<1x32xf32>
    %4 = vector.broadcast %3 : vector<1x32xf32> to vector<8x32xf32>
    %5 = arith.addf %2, %4 : vector<8x32xf32>
    %cst_5 = arith.constant 0.000000e+00 : f32
    %6 = vector.broadcast %cst_5 : f32 to vector<8x32xf32>
    %7 = arith.cmpf ogt, %5, %6 : vector<8x32xf32>
    %cst_6 = arith.constant 0.00999999977 : f32
    %8 = vector.broadcast %cst_6 : f32 to vector<8x32xf32>
    %9 = arith.mulf %8, %5 : vector<8x32xf32>
    %10 = arith.select %7, %5, %9 : vector<8x32xi1>, vector<8x32xf32>
    %c0_7 = arith.constant 0 : index
    %c0_8 = arith.constant 0 : index
    %11 = vector.load %arg4[%c0_7, %c0_8] : memref<32x6xf32, #tpu.memory_space<vmem>>, vector<32x6xf32>
    %cst_9 = arith.constant dense<0.000000e+00> : vector<8x6xf32>
    %12 = tpu.matmul %10, %11, %cst_9 {dimension_numbers = #tpu.dot_dimension_numbers<[1], [0], [0], [1], [0, 0, 1, 1], [], []>} : vector<8x32xf32>, vector<32x6xf32>, vector<8x6xf32> -> vector<8x6xf32>
    %c0_10 = arith.constant 0 : index
    %c0_11 = arith.constant 0 : index
    %13 = vector.load %arg5[%c0_10, %c0_11] : memref<1x6xf32, #tpu.memory_space<vmem>>, vector<1x6xf32>
    %14 = vector.broadcast %13 : vector<1x6xf32> to vector<8x6xf32>
    %15 = arith.addf %12, %14 : vector<8x6xf32>
    %16 = vector.extract_strided_slice %15 {offsets = [0, 0], sizes = [8, 4], strides = [1, 1]} : vector<8x6xf32> to vector<8x4xf32>
    %cst_12 = arith.constant dense<0xFF800000> : vector<8xf32>
    %17 = vector.multi_reduction <maximumf>, %16, %cst_12 [1] : vector<8x4xf32> to vector<8xf32>
    %18 = vector.shape_cast %17 : vector<8xf32> to vector<8x1xf32>
    %19 = vector.broadcast %18 : vector<8x1xf32> to vector<8x4xf32>
    %20 = arith.subf %16, %19 : vector<8x4xf32>
    %21 = math.exp %20 : vector<8x4xf32>
    %cst_13 = arith.constant dense<0.000000e+00> : vector<8xf32>
    %22 = vector.multi_reduction <add>, %21, %cst_13 [1] : vector<8x4xf32> to vector<8xf32>
    %23 = vector.shape_cast %22 : vector<8xf32> to vector<8x1xf32>
    %24 = tpu.reciprocal %23 {approx = true} : vector<8x1xf32> -> vector<8x1xf32>
    %25 = vector.broadcast %24 : vector<8x1xf32> to vector<8x4xf32>
    %26 = arith.mulf %21, %25 : vector<8x4xf32>
    %27 = vector.extract_strided_slice %15 {offsets = [0, 4], sizes = [8, 2], strides = [1, 1]} : vector<8x6xf32> to vector<8x2xf32>
    %cst_14 = arith.constant dense<0xFF800000> : vector<8xf32>
    %28 = vector.multi_reduction <maximumf>, %27, %cst_14 [1] : vector<8x2xf32> to vector<8xf32>
    %29 = vector.shape_cast %28 : vector<8xf32> to vector<8x1xf32>
    %30 = vector.broadcast %29 : vector<8x1xf32> to vector<8x2xf32>
    %31 = arith.subf %27, %30 : vector<8x2xf32>
    %32 = math.exp %31 : vector<8x2xf32>
    %cst_15 = arith.constant dense<0.000000e+00> : vector<8xf32>
    %33 = vector.multi_reduction <add>, %32, %cst_15 [1] : vector<8x2xf32> to vector<8xf32>
    %34 = vector.shape_cast %33 : vector<8xf32> to vector<8x1xf32>
    %35 = tpu.reciprocal %34 {approx = true} : vector<8x1xf32> -> vector<8x1xf32>
    %36 = vector.broadcast %35 : vector<8x1xf32> to vector<8x2xf32>
    %37 = arith.mulf %32, %36 : vector<8x2xf32>
    %c0_16 = arith.constant 0 : index
    %c0_17 = arith.constant 0 : index
    %38 = vector.load %arg6[%c0_16, %c0_17] : memref<8x6xf32, #tpu.memory_space<vmem>>, vector<8x4xf32>
    tpu.vector_store %arg6[%c0_16, %c0_17], %26 {strides = array<i32>} : memref<8x6xf32, #tpu.memory_space<vmem>>, vector<8x4xf32>,
    %c0_18 = arith.constant 0 : index
    %c4 = arith.constant 4 : index
    %39 = vector.load %arg6[%c0_18, %c4] : memref<8x6xf32, #tpu.memory_space<vmem>>, vector<8x2xf32>
    tpu.vector_store %arg6[%c0_18, %c4], %37 {strides = array<i32>} : memref<8x6xf32, #tpu.memory_space<vmem>>, vector<8x2xf32>,
    return
  }
  func.func @transform_0(%arg0: i32) -> (i32, i32) {
    %c0_i32 = arith.constant 0 : i32
    %c0_i32_0 = arith.constant 0 : i32
    return %arg0, %c0_i32 : i32, i32
  }
  func.func @transform_1(%arg0: i32) -> (i32, i32) {
    %c0_i32 = arith.constant 0 : i32
    %c0_i32_0 = arith.constant 0 : i32
    %c0_i32_1 = arith.constant 0 : i32
    return %c0_i32, %c0_i32_0 : i32, i32
  }
  func.func @transform_2(%arg0: i32) -> (i32, i32) {
    %c0_i32 = arith.constant 0 : i32
    %c0_i32_0 = arith.constant 0 : i32
    %c0_i32_1 = arith.constant 0 : i32
    return %c0_i32, %c0_i32_0 : i32, i32
  }
  func.func @transform_3(%arg0: i32) -> (i32, i32) {
    %c0_i32 = arith.constant 0 : i32
    %c0_i32_0 = arith.constant 0 : i32
    %c0_i32_1 = arith.constant 0 : i32
    return %c0_i32, %c0_i32_0 : i32, i32
  }
  func.func @transform_4(%arg0: i32) -> (i32, i32) {
    %c0_i32 = arith.constant 0 : i32
    %c0_i32_0 = arith.constant 0 : i32
    %c0_i32_1 = arith.constant 0 : i32
    return %c0_i32, %c0_i32_0 : i32, i32
  }
  func.func @transform_5(%arg0: i32) -> (i32, i32) {
    %c0_i32 = arith.constant 0 : i32
    %c0_i32_0 = arith.constant 0 : i32
    return %arg0, %c0_i32 : i32, i32
  }
}

</mosaic_0001>

<bundles_post_ra>
// kernel: tpu_custom_call.1
= control target key start
LH: loop header
LB: loop body
LE: loop exit
PB: predicated region body
PF: predicated region fallthrough
CT: control target
= control target key end

     0   :  { %v309_v1 = vmov 0.0   ;;  %vm310_vm0 = vmmov 0   ;;  %s386_s0 = inlined_call_operand.vmem [shape: f32[8,32], index: 0, kind: input, shape index: {}]   ;;  %s387_s1 = inlined_call_operand.vmem [shape: f32[32,32], index: 1, kind: input, shape index: {}]   ;;  %s388_s2 = inlined_call_operand.vmem [shape: f32[1,32], index: 2, kind: input, shape index: {}]   ;;  %s389_s3 = inlined_call_operand.vmem [shape: f32[32,6], index: 3, kind: input, shape index: {}]   ;;  %s390_s4 = inlined_call_operand.vmem [shape: f32[1,6], index: 4, kind: input, shape index: {}]   ;;  %s391_s5 = inlined_call_operand.hbm [shape: f32[8,6], index: 5, kind: output, shape index: {}]  }
   0x1   :  { %v25_v0 = vld [vmem:[%s387_s1 + $0x18] sm:$0xff]  ;;  %253 = vmatprep.subr.mxu0 %v309_v1  ;;  %v24_v2 = vld [vmem:[%s387_s1 + $0x10] sm:$0xff]  ;;  %261 = vmatprep.mubr.msk.f32.mxu0 %vm310_vm0, %v309_v1 }
   0x2   :  { %v113_v3 = vld [vmem:[%s389_s3 + $0x18] sm:$0xff]  ;;  %254 = vmatpush3.msra.mxu0 %v25_v0  ;;  %264 = vmatprep.subr.mxu1 %v309_v1 }
   0x3   :  { %10 = vsyncpa [#allocation3], 0  ;;  %255 = vmatprep.subr.mxu0 %v309_v1  ;;  %v23_v4 = vld [vmem:[%s387_s1 + $0x8] sm:$0xff]  ;;  %265 = vmatpush3.msra.mxu1 %v113_v3  ;;  %v22_v5 = vld [vmem:[%s387_s1] sm:$0xff]  ;;  %vm33_vm1 = vcmask 261120   ;;  %vm206_vm3 = vcmask 48160  }
   0x4   :  { %256 = vmatpush3.msra.mxu0 %v24_v2  ;;  %266 = vmatprep.subr.mxu1 %v309_v1  ;;  %v21_v6 = vld [vmem:[%s386_s0] sm:$0xff]  ;;  %v112_v7 = vld [vmem:[%s389_s3 + $0x10] sm:$0xff]  ;;  %v111_v8 = vld [vmem:[%s389_s3 + $0x8] sm:$0xff]  ;;  %vm194_vm4 = vcmask 31744   ;;  %vm217_vm5 = vcmask 15360  }
   0x5   :  { %257 = vmatprep.subr.mxu0 %v309_v1  ;;  %272 = vmatprep.mubr.msk.f32.mxu1 %vm310_vm0, %v309_v1  ;;  %v110_v9 = vld [vmem:[%s389_s3] sm:$0xff]  ;;  %s312_s3 = smov [#allocation2]  }
   0x6   :  { %258 = vmatpush3.msra.mxu0 %v23_v4  ;;  %267 = vmatpush3.msra.mxu1 %v112_v7  ;;  %v239_v10 = vld [vmem:[%s388_s2] ss:$0 sm:$0xff]  ;;  %s311_s2 = smov 124  }
   0x7   :  { %259 = vmatprep.subr.mxu0 %v309_v1  ;;  %268 = vmatprep.subr.mxu1 %v309_v1  ;;  %v241_v16 = vld [vmem:[%s390_s4] ss:$0 sm:$0xff]  ;;  %s231_s4 = sshll.u32 %s312_s3, 4  ;;  %s232_s4 = int_to_ptr.vmem [resolvable:$true] %s231_s4 }
   0x8   :  { %260 = vmatpush3.msra.mxu0 %v22_v5  ;;  %269 = vmatpush3.msra.mxu1 %v111_v8  ;;  %s287_s13 = scalar_lea.vmem %s232_s4, 128  ;;  %p292_p1 = scmp.lt.s32.totalorder %s232_s4, %s232_s4 }
   0x9   :  { %262 = vmatmul.mubr.msk.f32.vlgmr.msra.gmra.mxu0 %vm33_vm1, %v21_v6  ;;  %270 = vmatprep.subr.mxu1 %v309_v1  ;;  %p288_p0 = scmp.ne.s32.totalorder %s232_s4, %s287_s13  ;;  %p293_p2 = scmp.lt.s32.totalorder %s287_s13, %s287_s13 }
   0xa   :  { %271 = vmatpush3.msra.mxu1 %v110_v9 }
   0xb   :  { %p294_p3 = por %p293_p2, %p292_p1 }
   0xd   :  { %p295_p4 = pnand %p294_p3, %p288_p0 }
  0xc9   :  { %v103_v11 = vpop.f32.mrf.mxu0 }
  0xca   :  { %v104_v12 = vadd.f32 %v239_v10, %v103_v11 }
  0xcb   :  { %v263_v13 = vpop.f32.mrf.mxu0 }
  0xcc   :  { %vm107_vm2 = vcmp.gt.f32.partialorder %v104_v12, 0.0  ;;  %v108_v14 = vmul.f32 0.01, %v104_v12 }
  0xce   :  { %v109_v15 = vsel %vm107_vm2, %v104_v12, %v108_v14 }
  0xcf   :  { %273 = vmatmul.mubr.msk.f32.vlgmr.msra.gmra.mxu1 %vm33_vm1, %v109_v15 }
 0x18f   :  { %v190_v17 = vpop.f32.mrf.mxu1 }
 0x190   :  { %v191_v18 = vadd.f32 %v241_v16, %v190_v17 }
 0x191   :  { %v274_v19 = vpop.f32.mrf.mxu1 }
 0x192   :  { %v207_v20 = vsel %vm206_vm3, %v191_v18, -inf  ;;  %v195_v21 = vsel %vm194_vm4, %v191_v18, -inf }
 0x193   :  { %208 = vmax.xlane.f32.xlu0 %v207_v20 }
 0x197   :  { %196 = vmax.xlane.f32.xlu0 %v195_v21 }
 0x21c   :  { %v209_v22 = vpop.xlane.xlu0 %208 }
 0x21d   :  { %v210_v23 = vsub.f32 %v191_v18, %v209_v22 }
 0x21f   :  { %v211_v24 = vmul.f32 1.442695, %v210_v23 }
 0x220   :  { %v197_v26 = vpop.xlane.xlu0 %196 }
 0x221   :  { %279 = vpow2.f32 %v211_v24  ;;  %v198_v27 = vsub.f32 %v191_v18, %v197_v26 }
 0x223   :  { %v199_v28 = vmul.f32 1.442695, %v198_v27 }
 0x225   :  { %281 = vpow2.f32 %v199_v28 }
 0x22e   :  { %v280_v25 = vpop.eup %279 }
 0x22f   :  { %214 = vrot.lane.b32.xlu1 %v280_v25, %s311_s2 }
 0x232   :  { %v282_v29 = vpop.eup %281 }
 0x233   :  { %v201_v30 = vsel %vm194_vm4, %v282_v29, 0.0 }
 0x253   :  { %202 = vadd.xlane.f32.xlu1 %v201_v30 }
 0x2a1   :  { %v215_v31 = vpop.permute.xlu1 %214 }
 0x2a2   :  { %v218_v32 = vsel %vm217_vm5, %v215_v31, 0.0 }
 0x2a3   :  { %219 = vadd.xlane.f32.xlu0 %v218_v32 }
 0x2dc   :  { %v203_v33 = vpop.xlane.xlu1 %202 }
 0x2dd   :  { %283 = vrcp.f32 %v203_v33 }
 0x2ea   :  { %v284_v34 = vpop.eup %283 }
 0x2eb   :  { %v205_v35 = vmul.f32 %v284_v34, %v282_v29 }
 0x2ed   :  { %223 = vst.msk [vmem:[#allocation2] sm:$0xff] %vm194_vm4, %v205_v35 }
 0x32c   :  { %v220_v36 = vpop.xlane.xlu0 %219 }
 0x32d   :  { %285 = vrcp.f32 %v220_v36 }
 0x33a   :  { %v286_v37 = vpop.eup %285 }
 0x33b   :  { %v222_v38 = vmul.f32 %v286_v37, %v280_v25 }
 0x33d   :  { %224 = vst.msk [vmem:[#allocation2] sm:$0xff] %vm206_vm3, %v222_v38 }
 0x33e   :  { %298 = shalt.err (!%p295_p4)
}
 0x33f   :  { %234 = dma.vmem_to_hbm [thread:$0]  %s232_s4, 128, %s391_s5, [#allocation3]  }
 0x340   :  { %307 = dma.done.wait [#allocation3], 128  }
 0x341   :  { %308 = vsyncadd [#allocation3], 4294967168 }
 0x342   :  { %238 = vsyncpa [#allocation3], 1 }

</bundles_post_ra>
